<compile_context>
chip_gen: v6e
topology: v6e:2x2x1
jax: 0.10.0
libtpu: 0.0.40
codegen_flags: <defaults>
</compile_context>

<pallas_src>
import functools

import jax
import jax.numpy as jnp
from jax.experimental import pallas as pl
from jax.experimental.pallas import tpu as pltpu


def _round_up(x, m):
    return ((x + m - 1) // m) * m


def _cdiv(a, b):
    return -(-a // b)


def _kde_kernel(scal_ref, test_ref, train_ref, out_ref, *, tk, num_sub, use_bf16):
    # scal_ref:  SMEM (2,) f32        -- [neg_inv_2var, coef_over_n]
    # test_ref:  VMEM (tm, 1)  f32    -- one tile of test points (sublane axis)
    # train_ref: VMEM (1, num_sub*tk) -- num_sub train sub-chunks (lane axis)
    # out_ref:   VMEM (tm, 1)  f32    -- densities; VMEM-resident across the k axis
    k = pl.program_id(1)

    @pl.when(k == 0)
    def _():
        out_ref[...] = jnp.zeros_like(out_ref)

    cdt = jnp.bfloat16 if use_bf16 else jnp.float32
    neg_inv_2var = scal_ref[0].astype(cdt)
    t = test_ref[...].astype(cdt)                      # (tm, 1)

    acc = jnp.zeros(out_ref.shape, jnp.float32)
    # Static unroll over sub-chunks (num_sub <= c_max, small): static slice starts
    # give aligned lane loads; fully unrolled straight-line code for the scheduler.
    for sub in range(num_sub):
        tr = train_ref[:, pl.ds(sub * tk, tk)].astype(cdt)   # (1, tk)
        d = t - tr                                           # (tm, tk)   VPU
        e = jnp.exp(d * d * neg_inv_2var)                    # (tm, tk)   EUP
        acc = acc + jnp.sum(e.astype(jnp.float32),           # lane reduce: XLU
                            axis=1, keepdims=True)

    out_ref[...] += acc

    @pl.when(k == pl.num_programs(1) - 1)
    def _():
        out_ref[...] = out_ref[...] * scal_ref[1]            # * coef / true_n


def _gauss_optimal_bandwidth(train_xs):
    # estimate_bandwidth(..., 'Gauss-optimal'): 1.06 * unbiased std * n^(-0.2)
    n = train_xs.shape[0]
    sample_std = jnp.std(train_xs, ddof=1)
    return 1.06 * sample_std * (n ** (-0.2))


def _tile_rows(m, tm_max):
    """Balanced test-row tiling (multiples of 8); >=2 tiles when m >= 16 (v7x TCs)."""
    m8 = _round_up(max(m, 1), 8)
    num_i = _cdiv(m8, tm_max)
    if m >= 16:
        num_i = max(num_i, 2)        # keep both TensorCores busy on v7x
    tm = _round_up(_cdiv(m8, num_i), 8)
    return tm, num_i, num_i * tm


def _tile_cols(n, tk_max, c_max):
    """Balanced train-column tiling: tk (lane width, mult of 128), num_sub
    sub-chunks per grid step, num_k grid steps along the reduction axis."""
    n128 = _round_up(max(n, 1), 128)
    if n128 <= tk_max:
        return n128, 1, 1
    total = _cdiv(n128, tk_max)           # sub-chunks needed at max width
    num_k = _cdiv(total, c_max)           # grid steps on the train axis
    num_sub = _cdiv(total, num_k)         # sub-chunks per grid step
    total = num_k * num_sub
    tk = _round_up(_cdiv(n128, total), 128)   # re-balance width across all chunks
    return tk, num_sub, num_k


@functools.partial(jax.jit,
                   static_argnames=("tm_max", "tk_max", "c_max", "use_bf16"))
def kde_forward(test_xs, train_xs, tm_max=256, tk_max=2048, c_max=8,
                use_bf16=False):
    """Pallas KDE forward. test_xs: (M,), train_xs: (N,) -> (M,) f32 densities."""
    test_xs = test_xs.astype(jnp.float32)
    train_xs = train_xs.astype(jnp.float32)
    m = test_xs.shape[0]
    n = train_xs.shape[0]

    # NOTE: n == 1 (unbiased std -> NaN) or constant train data (bw == 0) are
    # degenerate exactly as in the PyTorch reference; no extra guarding here.
    bw = _gauss_optimal_bandwidth(train_xs)
    var = bw * bw
    neg_inv_2var = -0.5 / var
    coef_over_n = 1.0 / (n * jnp.sqrt(2.0 * jnp.pi * var))
    scal = jnp.stack([neg_inv_2var, coef_over_n]).astype(jnp.float32)

    tm, num_i, m_pad = _tile_rows(m, tm_max)
    tk, num_sub, num_k = _tile_cols(n, tk_max, c_max)
    n_pad = num_k * num_sub * tk

    # Sentinel padding for train columns: >= 64 bandwidths (+1) away from every
    # test point, so exp(x_sq * neg_inv_2var) underflows to exactly 0.0 (f32 and
    # bf16) -> no in-kernel mask; the mean divides by the true n via coef_over_n.
    pad_val = jnp.max(jnp.abs(test_xs)) + 64.0 * jnp.abs(bw) + 1.0
    train_p = jnp.full((1, n_pad), pad_val, jnp.float32).at[0, :n].set(train_xs)
    test_p = jnp.zeros((m_pad, 1), jnp.float32).at[:m, 0].set(test_xs)

    grid = (num_i, num_k)   # test axis parallel; train (reduction) axis last

    out = pl.pallas_call(
        functools.partial(_kde_kernel, tk=tk, num_sub=num_sub, use_bf16=use_bf16),
        out_shape=jax.ShapeDtypeStruct((m_pad, 1), jnp.float32),
        grid_spec=pl.GridSpec(
            grid=grid,
            in_specs=[
                pl.BlockSpec(memory_space=pltpu.MemorySpace.SMEM),     # scalars
                pl.BlockSpec((tm, 1), lambda i, k: (i, 0)),            # test tile
                pl.BlockSpec((1, num_sub * tk), lambda i, k: (0, k)),  # train chunk
            ],
            out_specs=pl.BlockSpec((tm, 1), lambda i, k: (i, 0)),
        ),
        compiler_params=pltpu.CompilerParams(
            dimension_semantics=("parallel", "arbitrary"),
            vmem_limit_bytes=32 * 1024 * 1024),
    )(scal, test_p, train_p)

    return out[:m, 0]


def kde_forward_reference(test_xs, train_xs):
    """Plain-JAX reference matching the PyTorch GaussianKernel.forward."""
    test_xs = test_xs.astype(jnp.float32)
    train_xs = train_xs.astype(jnp.float32)
    bw = _gauss_optimal_bandwidth(train_xs)
    var = bw * bw
    diffs = test_xs[:, None] - train_xs[None, :]
    e = jnp.exp(-(diffs ** 2) / (2.0 * var))
    coef = 1.0 / jnp.sqrt(2.0 * jnp.pi * var)
    return (coef * e).mean(axis=1)


if __name__ == "__main__":
    key = jax.random.PRNGKey(0)
    k_train, k_test = jax.random.split(key)

    # train_Xs is the module's "parameter" (its __init__ argument); built in-script.
    n_train = 500   # not a multiple of 128 -> exercises balanced sentinel padding
    n_test = 200    # not a multiple of 8   -> exercises balanced row padding
    train_xs = jax.random.normal(k_train, (n_train,), dtype=jnp.float32)
    test_xs = jax.random.normal(k_test, (n_test,), dtype=jnp.float32) * 1.5

    ref = jax.block_until_ready(kde_forward_reference(test_xs, train_xs))

    # Default tiles: single train grid step, 2-way split of the test axis
    # (forced >=2 tiles so both v7x TensorCores get work).
    out_default = jax.block_until_ready(kde_forward(test_xs, train_xs))

    # Small tiles: 4x2 grid with 2 sub-chunks per train step -> exercises the
    # cross-step out_ref accumulation and the in-kernel sub-chunk loop.
    out_small = jax.block_until_ready(
        kde_forward(test_xs, train_xs, tm_max=64, tk_max=128, c_max=2))

    # Optional bf16 compute path (EUP/VPU ~2x on v6e/v7x); looser tolerance.
    out_bf16 = jax.block_until_ready(
        kde_forward(test_xs, train_xs, use_bf16=True))

    assert out_default.shape == (n_test,)
    assert out_small.shape == (n_test,)
    assert out_bf16.shape == (n_test,)
    assert jnp.allclose(out_default, ref, rtol=1e-4, atol=1e-6), (out_default, ref)
    assert jnp.allclose(out_small, ref, rtol=1e-4, atol=1e-6), (out_small, ref)
    assert bool(jnp.all(jnp.isfinite(out_bf16)))
    assert jnp.allclose(out_bf16, ref, rtol=0.25, atol=1e-3), (out_bf16, ref)

    print("KERNEL_OK")
</pallas_src>

<mosaic_0001>
module attributes {stable_mosaic.version = 11 : i64} {
  func.func @_kde_kernel(%arg0: i32, %arg1: i32, %arg2: memref<2xf32, #tpu.memory_space<smem>>, %arg3: memref<104x1xf32, #tpu.memory_space<vmem>>, %arg4: memref<1x512xf32, #tpu.memory_space<vmem>>, %arg5: memref<104x1xf32, #tpu.memory_space<vmem>>) attributes {dimension_semantics = [#tpu.dimension_semantics<parallel>, #tpu.dimension_semantics<arbitrary>], iteration_bounds = array<i64: 2, 1>, scalar_prefetch = 0 : i64, scratch_operands = 0 : i64, tpu.core_type = #tpu.core_type<tc>, window_params = [{transform_indices = @transform_0, window_bounds = array<i64: 2>}, {transform_indices = @transform_1, window_bounds = array<i64: 104, 1>}, {transform_indices = @transform_2, window_bounds = array<i64: 1, 512>}, {transform_indices = @transform_3, window_bounds = array<i64: 104, 1>}]} {
    %c0_i32 = arith.constant 0 : i32
    %0 = arith.cmpi eq, %arg1, %c0_i32 : i32
    %1 = arith.extui %0 : i1 to i32
    %c0_i32_0 = arith.constant 0 : i32
    %2 = arith.cmpi ne, %1, %c0_i32_0 : i32
    scf.if %2 {
      %cst_12 = arith.constant 0.000000e+00 : f32
      %23 = vector.broadcast %cst_12 : f32 to vector<104x1xf32>
      %c0_13 = arith.constant 0 : index
      %c0_14 = arith.constant 0 : index
      %24 = vector.load %arg5[%c0_13, %c0_14] : memref<104x1xf32, #tpu.memory_space<vmem>>, vector<104x1xf32>
      tpu.vector_store %arg5[%c0_13, %c0_14], %23 {strides = array<i32>} : memref<104x1xf32, #tpu.memory_space<vmem>>, vector<104x1xf32>,
    } else {
    }
    %c0 = arith.constant 0 : index
    %3 = memref.load %arg2[%c0] : memref<2xf32, #tpu.memory_space<smem>>
    %c0_1 = arith.constant 0 : index
    %c0_2 = arith.constant 0 : index
    %4 = vector.load %arg3[%c0_1, %c0_2] : memref<104x1xf32, #tpu.memory_space<vmem>>, vector<104x1xf32>
    %cst = arith.constant 0.000000e+00 : f32
    %5 = vector.broadcast %cst : f32 to vector<104x1xf32>
    %c0_3 = arith.constant 0 : index
    %c0_4 = arith.constant 0 : index
    %6 = vector.load %arg4[%c0_3, %c0_4] : memref<1x512xf32, #tpu.memory_space<vmem>>, vector<1x512xf32>
    %7 = vector.broadcast %4 : vector<104x1xf32> to vector<104x512xf32>
    %8 = vector.broadcast %6 : vector<1x512xf32> to vector<104x512xf32>
    %9 = arith.subf %7, %8 : vector<104x512xf32>
    %10 = arith.mulf %9, %9 : vector<104x512xf32>
    %11 = vector.broadcast %3 : f32 to vector<104x512xf32>
    %12 = arith.mulf %10, %11 : vector<104x512xf32>
    %13 = math.exp %12 : vector<104x512xf32>
    %cst_5 = arith.constant dense<0.000000e+00> : vector<104xf32>
    %14 = vector.multi_reduction <add>, %13, %cst_5 [1] : vector<104x512xf32> to vector<104xf32>
    %15 = vector.shape_cast %14 : vector<104xf32> to vector<104x1xf32>
    %16 = arith.addf %5, %15 : vector<104x1xf32>
    %c0_6 = arith.constant 0 : index
    %c0_7 = arith.constant 0 : index
    %17 = vector.load %arg5[%c0_6, %c0_7] : memref<104x1xf32, #tpu.memory_space<vmem>>, vector<104x1xf32>
    %18 = arith.addf %17, %16 : vector<104x1xf32>
    %c0_8 = arith.constant 0 : index
    %c0_9 = arith.constant 0 : index
    %19 = vector.load %arg5[%c0_8, %c0_9] : memref<104x1xf32, #tpu.memory_space<vmem>>, vector<104x1xf32>
    tpu.vector_store %arg5[%c0_8, %c0_9], %18 {strides = array<i32>} : memref<104x1xf32, #tpu.memory_space<vmem>>, vector<104x1xf32>,
    %c0_i32_10 = arith.constant 0 : i32
    %20 = arith.cmpi eq, %arg1, %c0_i32_10 : i32
    %21 = arith.extui %20 : i1 to i32
    %c0_i32_11 = arith.constant 0 : i32
    %22 = arith.cmpi ne, %21, %c0_i32_11 : i32
    scf.if %22 {
      %c0_12 = arith.constant 0 : index
      %c0_13 = arith.constant 0 : index
      %23 = vector.load %arg5[%c0_12, %c0_13] : memref<104x1xf32, #tpu.memory_space<vmem>>, vector<104x1xf32>
      %c1 = arith.constant 1 : index
      %24 = memref.load %arg2[%c1] : memref<2xf32, #tpu.memory_space<smem>>
      %25 = vector.broadcast %24 : f32 to vector<104x1xf32>
      %26 = arith.mulf %23, %25 : vector<104x1xf32>
      %c0_14 = arith.constant 0 : index
      %c0_15 = arith.constant 0 : index
      %27 = vector.load %arg5[%c0_14, %c0_15] : memref<104x1xf32, #tpu.memory_space<vmem>>, vector<104x1xf32>
      tpu.vector_store %arg5[%c0_14, %c0_15], %26 {strides = array<i32>} : memref<104x1xf32, #tpu.memory_space<vmem>>, vector<104x1xf32>,
    } else {
    }
    return
  }
  func.func @transform_0(%arg0: i32, %arg1: i32) -> i32 {
    %c0_i32 = arith.constant 0 : i32
    %c0_i32_0 = arith.constant 0 : i32
    return %c0_i32 : i32
  }
  func.func @transform_1(%arg0: i32, %arg1: i32) -> (i32, i32) {
    %c0_i32 = arith.constant 0 : i32
    %c0_i32_0 = arith.constant 0 : i32
    return %arg0, %c0_i32 : i32, i32
  }
  func.func @transform_2(%arg0: i32, %arg1: i32) -> (i32, i32) {
    %c0_i32 = arith.constant 0 : i32
    %c0_i32_0 = arith.constant 0 : i32
    return %c0_i32, %arg1 : i32, i32
  }
  func.func @transform_3(%arg0: i32, %arg1: i32) -> (i32, i32) {
    %c0_i32 = arith.constant 0 : i32
    %c0_i32_0 = arith.constant 0 : i32
    return %arg0, %c0_i32 : i32, i32
  }
}

</mosaic_0001>

<bundles_post_ra>
// kernel: kde_forward.1
= control target key start
LH: loop header
LB: loop body
LE: loop exit
PB: predicated region body
PF: predicated region fallthrough
CT: control target
= control target key end

     0   :  { %8 = vsyncpa [#allocation3], 0  ;;  %s1072_s12 = smov 0   ;;  %s1074_s13 = smov 0   ;;  %s1467_s0 = inlined_call_operand.vmem [shape: f32[2], index: 0, kind: input, shape index: {}]   ;;  %s1468_s1 = inlined_call_operand.vmem [shape: f32[208,1], index: 1, kind: input, shape index: {}]   ;;  %s1469_s2 = inlined_call_operand.vmem [shape: f32[1,512], index: 2, kind: input, shape index: {}]   ;;  %s1470_s3 = inlined_call_operand.vmem [shape: f32[208,1], index: 3, kind: output, shape index: {}]  }
   0x1   :  { %s1076_s14 = smov 0  }
   0x2 LB: > { %s850_s15 = sadd.s32 4294967295, %s1047_s14   ;;  %s26_s16 = sadd.s32 1, %s1043_s13  ;;  %s1047_s14 = sphi %s1076_s14, %s14_s14   ;;  %s1043_s13 = sphi %s1074_s13, %s1474_s13   ;;  %s1039_s12 = sphi %s1072_s12, %s1473_s12  }
   0x3   : > { %p28_p0 = scmp.ge.s32.totalorder %s26_s16, 2  ;;  %p852_p1 = scmp.ge.s32.totalorder %s1047_s14, 1 }
   0x4   : > { %p130_p2 = scmp.lt.s32.totalorder %s1047_s14, 3  ;;  %p1097_p4 = scmp.eq.s32.totalorder %s850_s15, 0 }
   0x5   : > { %s1476_s16 = smov (%p28_p0, %s26_s16), 0  ;;  %s143_s21 = sshll.u32 %s1467_s0, 4  ;;  %s144_s21 = int_to_ptr.vmem [resolvable:$true] %s143_s21 }
   0x6   : > { %p1093_p3 = pnand %p852_p1, %p130_p2  ;;  %s1006_s22 = scalar_lea.vmem %s144_s21, 16 }
   0x7   : > { %p1007_p7 = scmp.ne.s32.totalorder %s144_s21, %s1006_s22  ;;  %p1014_p11 = scmp.lt.s32.totalorder %s144_s21, %s144_s21 }
   0x8   : > { %p867_p5 = pneg %p1093_p3  ;;  %p1015_p12 = scmp.lt.s32.totalorder %s1006_s22, %s1006_s22 }
   0xa   : > { %p868_p6 = pnand %p1097_p4, %p867_p5  ;;  %p1016_p13 = por %p1015_p12, %p1014_p11 }
   0xc   : > { %p1008_p8 = pneg %p868_p6 }
   0xe   : > { %p1009_p9 = pnand %p1008_p8, %p1007_p7 }
  0x10   : > { %p1010_p10 = pneg %p1009_p9 }
  0x12   : > { %p1017_p0 = pnand %p1016_p13, %p1010_p10 }
  0x14   : > { %1020 = shalt.err (!%p1017_p0)
}
  0x15   : > { %s1049_s23 = smov [#allocation2]   ;;  %173 = sbr.rel (%p1093_p3) target bundleno = 404 (0x194), region = 32 }
  0x16   : > { %870 = dma.vmem_to_smem (!%p868_p6), %s144_s21, 16, %s1049_s23, [#allocation3]  }
  0x1a   : > { %1034 = dma.done.wait (%p1097_p4), [#allocation3], 16  }
  0x1b   : > { %1036 = vsyncadd (%p1097_p4), [#allocation3], 4294967280 }
  0x1c   : > { %179 = sfence }
  0x1d   : > { %s202_s24 = smul.u32 13, %s1039_s12  ;;  %v1050_v0 = vmov 0   ;;  %vm223_vm0 = vcmask 7168   ;;  %v1051_v14 = vmov 0.0   ;;  %v318_v15 = vlaneseq  ;;  %s237_s5 = sld [smem:[#allocation2]] }
  0x1e   : > { %901 = vset.pattern.permute.xlu1 %v1050_v0  ;;  %900 = vset.pattern.permute.xlu0 %v1050_v0  ;;  %v251_v21 = vld [vmem:[%s1469_s2] sm:$0xf]  ;;  %s860_s8 = sld [smem:[#allocation2 + $0x1]] }
  0x1f   : > { %p203_p1 = scmp.lt.s32.totalorder %s202_s24, 25  ;;  %v319_v16 = vshrl.u32 %v318_v15, 7 }
  0x21   : > { %s1478_s24 = smov (!%p203_p1, %s202_s24), 25  ;;  %v320_v17 = vsub.s32 0, %v319_v16  ;;  %v324_v18 = vsub.s32 1, %v319_v16  ;;  %v328_v19 = vsub.s32 2, %v319_v16  ;;  %v332_v20 = vsub.s32 3, %v319_v16 }
  0x22   : > { %s858_s25 = sshll.u32 %s1478_s24, 3 }
  0x23   : > { %s206_s28 = scalar_lea.vmem %s1468_s1, %s858_s25  ;;  %s1124_s4 = scalar_lea.vmem %s1470_s3, %s858_s25  ;;  %v1155_v22 = vrot.slane %v251_v21, %v320_v17  ;;  %v1157_v23 = vrot.slane %v251_v21, %v324_v18  ;;  %v1159_v24 = vrot.slane %v251_v21, %v328_v19  ;;  %v1161_v25 = vrot.slane %v251_v21, %v332_v20 }
  0x24   : > { %v240_v1 = vld [vmem:[%s206_s28 + $0x10] sm:$0xff]  ;;  %v238_v2 = vld [vmem:[%s206_s28] sm:$0xff]  ;;  %v241_v3 = vld [vmem:[%s206_s28 + $0x18] sm:$0xff]  ;;  %224 = vst.msk [vmem:[%s1124_s4] sm:$0xff] %vm223_vm0, %v1051_v14 }
  0x25   : > { %264 = vperm.xlu1 %901, %v240_v1   ;;  %254 = vperm.xlu0 %900, %v238_v2   ;;  %v239_v4 = vld [vmem:[%s206_s28 + $0x8] sm:$0xff]  ;;  %v242_v6 = vld [vmem:[%s206_s28 + $0x20] sm:$0xff]  ;;  %v245_v7 = vld [vmem:[%s206_s28 + $0x38] sm:$0xff]  ;;  %225 = vst.msk [vmem:[%s1124_s4 + $0x8] sm:$0xff] %vm223_vm0, %v1051_v14 }
  0x26   : > { %v243_v5 = vld [vmem:[%s206_s28 + $0x28] sm:$0xff]  ;;  %v244_v8 = vld [vmem:[%s206_s28 + $0x30] sm:$0xff]  ;;  %v246_v10 = vld [vmem:[%s206_s28 + $0x40] sm:$0xff]  ;;  %226 = vst.msk [vmem:[%s1124_s4 + $0x10] sm:$0xff] %vm223_vm0, %v1051_v14 }
  0x27   : > { %v247_v9 = vld [vmem:[%s206_s28 + $0x48] sm:$0xff]  ;;  %v249_v11 = vld [vmem:[%s206_s28 + $0x58] sm:$0xff]  ;;  %v248_v12 = vld [vmem:[%s206_s28 + $0x50] sm:$0xff]  ;;  %227 = vst.msk [vmem:[%s1124_s4 + $0x18] sm:$0xff] %vm223_vm0, %v1051_v14 }
  0x28   : > { %v250_v13 = vld [vmem:[%s206_s28 + $0x60] sm:$0xff]  ;;  %228 = vst.msk [vmem:[%s1124_s4 + $0x20] sm:$0xff] %vm223_vm0, %v1051_v14  ;;  %229 = vst.msk [vmem:[%s1124_s4 + $0x28] sm:$0xff] %vm223_vm0, %v1051_v14  ;;  %v1163_v26 = vstv %s237_s5 }
  0x29   : > { %269 = vperm.xlu1 %901, %v241_v3   ;;  %259 = vperm.xlu0 %900, %v239_v4   ;;  %230 = vst.msk [vmem:[%s1124_s4 + $0x30] sm:$0xff] %vm223_vm0, %v1051_v14  ;;  %231 = vst.msk [vmem:[%s1124_s4 + $0x38] sm:$0xff] %vm223_vm0, %v1051_v14 }
  0x2a   : > { %232 = vst.msk [vmem:[%s1124_s4 + $0x40] sm:$0xff] %vm223_vm0, %v1051_v14  ;;  %233 = vst.msk [vmem:[%s1124_s4 + $0x48] sm:$0xff] %vm223_vm0, %v1051_v14 }
  0x2b   : > { %234 = vst.msk [vmem:[%s1124_s4 + $0x50] sm:$0xff] %vm223_vm0, %v1051_v14  ;;  %235 = vst.msk [vmem:[%s1124_s4 + $0x58] sm:$0xff] %vm223_vm0, %v1051_v14 }
  0x2c   : > { %236 = vst.msk [vmem:[%s1124_s4 + $0x60] sm:$0xff] %vm223_vm0, %v1051_v14 }
  0x2d   : > { %279 = vperm.xlu1 %901, %v243_v5   ;;  %274 = vperm.xlu0 %900, %v242_v6  }
  0x31   : > { %289 = vperm.xlu1 %901, %v245_v7   ;;  %284 = vperm.xlu0 %900, %v244_v8  }
  0x35   : > { %299 = vperm.xlu1 %901, %v247_v9   ;;  %294 = vperm.xlu0 %900, %v246_v10  }
  0x39   : > { %309 = vperm.xlu1 %901, %v249_v11   ;;  %304 = vperm.xlu0 %900, %v248_v12  }
  0x3d   : > { %314 = vperm.xlu0 %900, %v250_v13  }
  0xa0   : > { %v265_v27 = vpop.permute.xlu1 %264  ;;  %v255_v28 = vpop.permute.xlu0 %254 }
  0xa1   : > { %v346_v29 = vsub.f32 %v265_v27, %v1155_v22  ;;  %v347_v30 = vsub.f32 %v265_v27, %v1157_v23  ;;  %v348_v31 = vsub.f32 %v265_v27, %v1159_v24  ;;  %v349_v32 = vsub.f32 %v265_v27, %v1161_v25 }
  0xa2   : > { %v338_v33 = vsub.f32 %v255_v28, %v1155_v22  ;;  %v339_v34 = vsub.f32 %v255_v28, %v1157_v23  ;;  %v340_v35 = vsub.f32 %v255_v28, %v1159_v24  ;;  %v341_v36 = vsub.f32 %v255_v28, %v1161_v25 }
  0xa3   : > { %v398_v37 = vmul.f32 %v346_v29, %v346_v29  ;;  %v399_v38 = vmul.f32 %v347_v30, %v347_v30  ;;  %v400_v39 = vmul.f32 %v348_v31, %v348_v31  ;;  %v401_v40 = vmul.f32 %v349_v32, %v349_v32 }
  0xa4   : > { %v390_v41 = vmul.f32 %v338_v33, %v338_v33  ;;  %v391_v42 = vmul.f32 %v339_v34, %v339_v34  ;;  %v392_v43 = vmul.f32 %v340_v35, %v340_v35  ;;  %v393_v44 = vmul.f32 %v341_v36, %v341_v36  ;;  %v270_v45 = vpop.permute.xlu1 %269  ;;  %v260_v62 = vpop.permute.xlu0 %259 }
  0xa5   : > { %v451_v46 = vmul.f32 %v1163_v26, %v398_v37  ;;  %v452_v47 = vmul.f32 %v1163_v26, %v399_v38  ;;  %v453_v48 = vmul.f32 %v1163_v26, %v400_v39  ;;  %v454_v49 = vmul.f32 %v1163_v26, %v401_v40 }
  0xa6   : > { %v443_v50 = vmul.f32 %v1163_v26, %v390_v41  ;;  %v444_v51 = vmul.f32 %v1163_v26, %v391_v42  ;;  %v445_v52 = vmul.f32 %v1163_v26, %v392_v43  ;;  %v446_v53 = vmul.f32 %v1163_v26, %v393_v44 }
  0xa7   : > { %v511_v54 = vmul.f32 1.442695, %v451_v46  ;;  %v513_v55 = vmul.f32 1.442695, %v452_v47  ;;  %v515_v56 = vmul.f32 1.442695, %v453_v48  ;;  %v350_v57 = vsub.f32 %v270_v45, %v1155_v22 }
  0xa8   : > { %v517_v58 = vmul.f32 1.442695, %v454_v49  ;;  %v495_v59 = vmul.f32 1.442695, %v443_v50  ;;  %v497_v60 = vmul.f32 1.442695, %v444_v51  ;;  %v351_v61 = vsub.f32 %v270_v45, %v1157_v23  ;;  %v280_v17 = vpop.permute.xlu1 %279  ;;  %v275_v38 = vpop.permute.xlu0 %274 }
  0xa9   : > { %902 = vpow2.f32 %v511_v54  ;;  %v499_v63 = vmul.f32 1.442695, %v445_v52  ;;  %v501_v0 = vmul.f32 1.442695, %v446_v53  ;;  %v352_v1 = vsub.f32 %v270_v45, %v1159_v24 }
  0xaa   : > { %904 = vpow2.f32 %v513_v55  ;;  %v353_v2 = vsub.f32 %v270_v45, %v1161_v25  ;;  %v402_v3 = vmul.f32 %v350_v57, %v350_v57  ;;  %v403_v4 = vmul.f32 %v351_v61, %v351_v61 }
  0xab   : > { %906 = vpow2.f32 %v515_v56  ;;  %v404_v5 = vmul.f32 %v352_v1, %v352_v1  ;;  %v342_v6 = vsub.f32 %v260_v62, %v1155_v22  ;;  %v343_v7 = vsub.f32 %v260_v62, %v1157_v23 }
  0xac   : > { %908 = vpow2.f32 %v517_v58  ;;  %v405_v8 = vmul.f32 %v353_v2, %v353_v2  ;;  %v455_v9 = vmul.f32 %v1163_v26, %v402_v3  ;;  %v456_v10 = vmul.f32 %v1163_v26, %v403_v4  ;;  %v290_v57 = vpop.permute.xlu1 %289 }
  0xad   : > { %910 = vpow2.f32 %v495_v59  ;;  %v457_v11 = vmul.f32 %v1163_v26, %v404_v5  ;;  %v344_v12 = vsub.f32 %v260_v62, %v1159_v24  ;;  %v345_v13 = vsub.f32 %v260_v62, %v1161_v25 }
  0xae   : > { %912 = vpow2.f32 %v497_v60  ;;  %v458_v14 = vmul.f32 %v1163_v26, %v405_v8  ;;  %v519_v15 = vmul.f32 1.442695, %v455_v9  ;;  %v521_v16 = vmul.f32 1.442695, %v456_v10 }
  0xaf   : > { %914 = vpow2.f32 %v499_v63  ;;  %v523_v18 = vmul.f32 1.442695, %v457_v11  ;;  %v394_v19 = vmul.f32 %v342_v6, %v342_v6  ;;  %v395_v20 = vmul.f32 %v343_v7, %v343_v7 }
  0xb0   : > { %916 = vpow2.f32 %v501_v0  ;;  %v525_v21 = vmul.f32 1.442695, %v458_v14  ;;  %v396_v27 = vmul.f32 %v344_v12, %v344_v12  ;;  %v397_v28 = vmul.f32 %v345_v13, %v345_v13 }
  0xb1   : > { %918 = vpow2.f32 %v519_v15  ;;  %v447_v29 = vmul.f32 %v1163_v26, %v394_v19  ;;  %v448_v30 = vmul.f32 %v1163_v26, %v395_v20  ;;  %v358_v31 = vsub.f32 %v280_v17, %v1155_v22 }
  0xb2   : > { %920 = vpow2.f32 %v521_v16  ;;  %v449_v32 = vmul.f32 %v1163_v26, %v396_v27  ;;  %v450_v33 = vmul.f32 %v1163_v26, %v397_v28  ;;  %v359_v34 = vsub.f32 %v280_v17, %v1157_v23  ;;  %v285_v16 = vpop.permute.xlu0 %284 }
  0xb3   : > { %922 = vpow2.f32 %v523_v18  ;;  %v503_v35 = vmul.f32 1.442695, %v447_v29  ;;  %v505_v36 = vmul.f32 1.442695, %v448_v30  ;;  %v360_v37 = vsub.f32 %v280_v17, %v1159_v24 }
  0xb4   : > { %924 = vpow2.f32 %v525_v21  ;;  %v507_v39 = vmul.f32 1.442695, %v449_v32  ;;  %v509_v40 = vmul.f32 1.442695, %v450_v33  ;;  %v361_v41 = vsub.f32 %v280_v17, %v1161_v25 }
  0xb5   : > { %926 = vpow2.f32 %v503_v35  ;;  %v410_v42 = vmul.f32 %v358_v31, %v358_v31  ;;  %v411_v43 = vmul.f32 %v359_v34, %v359_v34  ;;  %v412_v44 = vmul.f32 %v360_v37, %v360_v37 }
  0xb6   : > { %v1201_v45 = vpop.eup %902  ;;  %928 = vpow2.f32 %v505_v36  ;;  %v413_v46 = vmul.f32 %v361_v41, %v361_v41  ;;  %v354_v47 = vsub.f32 %v275_v38, %v1155_v22  ;;  %v355_v48 = vsub.f32 %v275_v38, %v1157_v23 }
  0xb7   : > { %v1205_v49 = vpop.eup %904  ;;  %930 = vpow2.f32 %v507_v39  ;;  %v463_v50 = vmul.f32 %v1163_v26, %v410_v42  ;;  %v464_v51 = vmul.f32 %v1163_v26, %v411_v43  ;;  %v465_v52 = vmul.f32 %v1163_v26, %v412_v44  ;;  %v300_v42 = vpop.permute.xlu1 %299 }
  0xb8   : > { %v1210_v53 = vpop.eup %906  ;;  %932 = vpow2.f32 %v509_v40  ;;  %v466_v54 = vmul.f32 %v1163_v26, %v413_v46  ;;  %v356_v55 = vsub.f32 %v275_v38, %v1159_v24  ;;  %v357_v56 = vsub.f32 %v275_v38, %v1161_v25 }
  0xb9   : > { %v1215_v58 = vpop.eup %908  ;;  %v535_v59 = vmul.f32 1.442695, %v463_v50  ;;  %v537_v60 = vmul.f32 1.442695, %v464_v51  ;;  %v539_v61 = vmul.f32 1.442695, %v465_v52  ;;  %v406_v62 = vmul.f32 %v354_v47, %v354_v47 }
  0xba   : > { %v1217_v63 = vpop.eup %910  ;;  %v541_v0 = vmul.f32 1.442695, %v466_v54  ;;  %v407_v1 = vmul.f32 %v355_v48, %v355_v48  ;;  %v408_v2 = vmul.f32 %v356_v55, %v356_v55  ;;  %v409_v3 = vmul.f32 %v357_v56, %v357_v56 }
  0xbb   : > { %v1219_v4 = vpop.eup %912  ;;  %934 = vpow2.f32 %v535_v59  ;;  %v459_v5 = vmul.f32 %v1163_v26, %v406_v62  ;;  %v366_v6 = vsub.f32 %v290_v57, %v1155_v22  ;;  %v367_v7 = vsub.f32 %v290_v57, %v1157_v23 }
  0xbc   : > { %v1224_v8 = vpop.eup %914  ;;  %936 = vpow2.f32 %v537_v60  ;;  %v460_v9 = vmul.f32 %v1163_v26, %v407_v1  ;;  %v461_v10 = vmul.f32 %v1163_v26, %v408_v2  ;;  %v462_v11 = vmul.f32 %v1163_v26, %v409_v3  ;;  %v295_v2 = vpop.permute.xlu0 %294 }
  0xbd   : > { %v1229_v12 = vpop.eup %916  ;;  %938 = vpow2.f32 %v539_v61  ;;  %v527_v13 = vmul.f32 1.442695, %v459_v5  ;;  %v368_v14 = vsub.f32 %v290_v57, %v1159_v24  ;;  %v369_v15 = vsub.f32 %v290_v57, %v1161_v25 }
  0xbe   : > { %v1233_v17 = vpop.eup %918  ;;  %940 = vpow2.f32 %v541_v0  ;;  %v529_v19 = vmul.f32 1.442695, %v460_v9  ;;  %v418_v20 = vmul.f32 %v366_v6, %v366_v6  ;;  %v419_v21 = vmul.f32 %v367_v7, %v367_v7 }
  0xbf   : > { %v1235_v18 = vpop.eup %920  ;;  %v420_v27 = vmul.f32 %v368_v14, %v368_v14  ;;  %v531_v29 = vmul.f32 1.442695, %v461_v10  ;;  %v421_v30 = vmul.f32 %v369_v15, %v369_v15  ;;  %v362_v31 = vsub.f32 %v285_v16, %v1155_v22 }
  0xc0   : > { %v1237_v28 = vpop.eup %922  ;;  %v363_v32 = vsub.f32 %v285_v16, %v1157_v23  ;;  %942 = vpow2.f32 %v527_v13  ;;  %v533_v34 = vmul.f32 1.442695, %v462_v11  ;;  %v471_v35 = vmul.f32 %v1163_v26, %v418_v20 }
  0xc1   : > { %v1241_v33 = vpop.eup %924  ;;  %v472_v36 = vmul.f32 %v1163_v26, %v419_v21  ;;  %v473_v38 = vmul.f32 %v1163_v26, %v420_v27  ;;  %v474_v39 = vmul.f32 %v1163_v26, %v421_v30  ;;  %v364_v40 = vsub.f32 %v285_v16, %v1159_v24 }
  0xc2   : > { %v1245_v37 = vpop.eup %926  ;;  %v365_v41 = vsub.f32 %v285_v16, %v1161_v25  ;;  %944 = vpow2.f32 %v529_v19  ;;  %v551_v44 = vmul.f32 1.442695, %v471_v35  ;;  %v414_v46 = vmul.f32 %v362_v31, %v362_v31 }
  0xc3   : > { %v1251_v43 = vpop.eup %928  ;;  %v553_v48 = vmul.f32 1.442695, %v472_v36  ;;  %v415_v50 = vmul.f32 %v363_v32, %v363_v32  ;;  %v416_v51 = vmul.f32 %v364_v40, %v364_v40  ;;  %946 = vpow2.f32 %v531_v29 }
  0xc4   : > { %v1253_v47 = vpop.eup %930  ;;  %v417_v52 = vmul.f32 %v365_v41, %v365_v41  ;;  %v467_v55 = vmul.f32 %v1163_v26, %v414_v46  ;;  %v374_v56 = vsub.f32 %v300_v42, %v1155_v22  ;;  %v375_v57 = vsub.f32 %v300_v42, %v1157_v23 }
  0xc5   : > { %v1255_v54 = vpop.eup %932  ;;  %948 = vpow2.f32 %v533_v34  ;;  %v555_v59 = vmul.f32 1.442695, %v473_v38  ;;  %v557_v60 = vmul.f32 1.442695, %v474_v39  ;;  %v468_v61 = vmul.f32 %v1163_v26, %v415_v50  ;;  %v310_v34 = vpop.permute.xlu1 %309 }
  0xc6   : > { %950 = vpow2.f32 %v551_v44  ;;  %v469_v62 = vmul.f32 %v1163_v26, %v416_v51  ;;  %v376_v0 = vsub.f32 %v300_v42, %v1159_v24  ;;  %v377_v1 = vsub.f32 %v300_v42, %v1161_v25 }
  0xc7   : > { %952 = vpow2.f32 %v553_v48  ;;  %v470_v5 = vmul.f32 %v1163_v26, %v417_v52  ;;  %v543_v6 = vmul.f32 1.442695, %v467_v55  ;;  %v545_v9 = vmul.f32 1.442695, %v468_v61 }
  0xc8   : > { %v1264_v3 = vpop.eup %934  ;;  %v426_v10 = vmul.f32 %v374_v56, %v374_v56  ;;  %v427_v11 = vmul.f32 %v375_v57, %v375_v57  ;;  %v428_v13 = vmul.f32 %v376_v0, %v376_v0  ;;  %954 = vpow2.f32 %v555_v59  ;;  %v305_v59 = vpop.permute.xlu0 %304 }
  0xc9   : > { %v1267_v7 = vpop.eup %936  ;;  %v429_v15 = vmul.f32 %v377_v1, %v377_v1  ;;  %v370_v16 = vsub.f32 %v295_v2, %v1155_v22  ;;  %v371_v19 = vsub.f32 %v295_v2, %v1157_v23  ;;  %956 = vpow2.f32 %v557_v60 }
  0xca   : > { %v1269_v14 = vpop.eup %938  ;;  %v547_v21 = vmul.f32 1.442695, %v469_v62  ;;  %v479_v27 = vmul.f32 %v1163_v26, %v426_v10  ;;  %v480_v29 = vmul.f32 %v1163_v26, %v427_v11  ;;  %958 = vpow2.f32 %v543_v6 }
  0xcb   : > { %v1273_v20 = vpop.eup %940  ;;  %v481_v30 = vmul.f32 %v1163_v26, %v428_v13  ;;  %v372_v31 = vsub.f32 %v295_v2, %v1159_v24  ;;  %v373_v32 = vsub.f32 %v295_v2, %v1161_v25  ;;  %960 = vpow2.f32 %v545_v9 }
  0xcc   : > { %v549_v35 = vmul.f32 1.442695, %v470_v5  ;;  %v482_v36 = vmul.f32 %v1163_v26, %v429_v15  ;;  %v422_v38 = vmul.f32 %v370_v16, %v370_v16  ;;  %v567_v40 = vmul.f32 1.442695, %v479_v27 }
  0xcd   : > { %v1281_v39 = vpop.eup %942  ;;  %v423_v41 = vmul.f32 %v371_v19, %v371_v19  ;;  %v424_v42 = vmul.f32 %v372_v31, %v372_v31  ;;  %v425_v44 = vmul.f32 %v373_v32, %v373_v32  ;;  %v569_v46 = vmul.f32 1.442695, %v480_v29 }
  0xce   : > { %v475_v48 = vmul.f32 %v1163_v26, %v422_v38  ;;  %v382_v50 = vsub.f32 %v310_v34, %v1155_v22  ;;  %v383_v51 = vsub.f32 %v310_v34, %v1157_v23  ;;  %962 = vpow2.f32 %v547_v21 }
  0xcf   : > { %v1286_v52 = vpop.eup %944  ;;  %v571_v55 = vmul.f32 1.442695, %v481_v30  ;;  %v476_v56 = vmul.f32 %v1163_v26, %v423_v41  ;;  %v477_v57 = vmul.f32 %v1163_v26, %v424_v42  ;;  %964 = vpow2.f32 %v549_v35 }
  0xd0   : > { %v573_v60 = vmul.f32 1.442695, %v482_v36  ;;  %v384_v61 = vsub.f32 %v310_v34, %v1159_v24  ;;  %v1291_v62 = vpop.eup %946  ;;  %966 = vpow2.f32 %v567_v40  ;;  %v478_v0 = vmul.f32 %v1163_v26, %v425_v44 }
  0xd1   : > { %v559_v1 = vmul.f32 1.442695, %v475_v48  ;;  %v385_v2 = vsub.f32 %v310_v34, %v1161_v25  ;;  %968 = vpow2.f32 %v569_v46  ;;  %v561_v6 = vmul.f32 1.442695, %v476_v56  ;;  %v315_v34 = vpop.permute.xlu0 %314 }
  0xd2   : > { %v1295_v5 = vpop.eup %948  ;;  %v434_v9 = vmul.f32 %v382_v50, %v382_v50  ;;  %v435_v10 = vmul.f32 %v383_v51, %v383_v51  ;;  %970 = vpow2.f32 %v571_v55  ;;  %v563_v13 = vmul.f32 1.442695, %v477_v57 }
  0xd3   : > { %v1297_v11 = vpop.eup %950  ;;  %v378_v15 = vsub.f32 %v305_v59, %v1155_v22  ;;  %v379_v16 = vsub.f32 %v305_v59, %v1157_v23  ;;  %972 = vpow2.f32 %v573_v60  ;;  %v436_v21 = vmul.f32 %v384_v61, %v384_v61 }
  0xd4   : > { %v1301_v19 = vpop.eup %952  ;;  %v487_v27 = vmul.f32 %v1163_v26, %v434_v9  ;;  %v488_v29 = vmul.f32 %v1163_v26, %v435_v10  ;;  %974 = vpow2.f32 %v559_v1  ;;  %v565_v30 = vmul.f32 1.442695, %v478_v0 }
  0xd5   : > { %v437_v31 = vmul.f32 %v385_v2, %v385_v2  ;;  %v380_v32 = vsub.f32 %v305_v59, %v1159_v24  ;;  %v1306_v35 = vpop.eup %954  ;;  %976 = vpow2.f32 %v561_v6  ;;  %v430_v38 = vmul.f32 %v378_v15, %v378_v15 }
  0xd6   : > { %v583_v36 = vmul.f32 1.442695, %v487_v27  ;;  %v1308_v40 = vpop.eup %956  ;;  %978 = vpow2.f32 %v563_v13  ;;  %v585_v41 = vmul.f32 1.442695, %v488_v29  ;;  %v381_v42 = vsub.f32 %v305_v59, %v1161_v25 }
  0xd7   : > { %v431_v44 = vmul.f32 %v379_v16, %v379_v16  ;;  %v1311_v46 = vpop.eup %958  ;;  %v489_v48 = vmul.f32 %v1163_v26, %v436_v21  ;;  %v483_v50 = vmul.f32 %v1163_v26, %v430_v38  ;;  %v386_v51 = vsub.f32 %v315_v34, %v1155_v22 }
  0xd8   : > { %v387_v55 = vsub.f32 %v315_v34, %v1157_v23  ;;  %v1317_v56 = vpop.eup %960  ;;  %980 = vpow2.f32 %v565_v30  ;;  %v490_v57 = vmul.f32 %v1163_v26, %v437_v31  ;;  %v432_v60 = vmul.f32 %v380_v32, %v380_v32 }
  0xd9   : > { %v484_v61 = vmul.f32 %v1163_v26, %v431_v44  ;;  %982 = vpow2.f32 %v583_v36  ;;  %v388_v59 = vsub.f32 %v315_v34, %v1159_v24  ;;  %v433_v0 = vmul.f32 %v381_v42, %v381_v42 }
  0xda   : > { %984 = vpow2.f32 %v585_v41  ;;  %v575_v1 = vmul.f32 1.442695, %v483_v50  ;;  %v587_v6 = vmul.f32 1.442695, %v489_v48  ;;  %v438_v9 = vmul.f32 %v386_v51, %v386_v51 }
  0xdb   : > { %v1322_v2 = vpop.eup %962  ;;  %v577_v22 = vmul.f32 1.442695, %v484_v61  ;;  %v439_v23 = vmul.f32 %v387_v55, %v387_v55  ;;  %v589_v13 = vmul.f32 1.442695, %v490_v57  ;;  %v485_v15 = vmul.f32 %v1163_v26, %v432_v60 }
  0xdc   : > { %v1324_v10 = vpop.eup %964  ;;  %v599_v16 = vadd.f32 %v1219_v4, %v1217_v63  ;;  %v614_v24 = vadd.f32 %v1235_v18, %v1233_v17  ;;  %v389_v27 = vsub.f32 %v315_v34, %v1161_v25  ;;  %v440_v29 = vmul.f32 %v388_v59, %v388_v59 }
  0xdd   : > { %v967_v21 = vpop.eup %966  ;;  %v491_v30 = vmul.f32 %v1163_v26, %v438_v9  ;;  %v492_v31 = vmul.f32 %v1163_v26, %v439_v23  ;;  %v486_v36 = vmul.f32 %v1163_v26, %v433_v0  ;;  %986 = vpow2.f32 %v575_v1 }
  0xde   : > { %v969_v32 = vpop.eup %968  ;;  %v600_v38 = vadd.f32 %v1224_v8, %v599_v16  ;;  %v615_v41 = vadd.f32 %v1237_v28, %v614_v24  ;;  %988 = vpow2.f32 %v577_v22  ;;  %v604_v25 = vadd.f32 %v1251_v43, %v1245_v37 }
  0xdf   : > { %v971_v63 = vpop.eup %970  ;;  %v591_v4 = vmul.f32 1.442695, %v491_v30  ;;  %v593_v17 = vmul.f32 1.442695, %v492_v31  ;;  %990 = vpow2.f32 %v587_v6  ;;  %v579_v34 = vmul.f32 1.442695, %v485_v15 }
  0xe0   : > { %v973_v18 = vpop.eup %972  ;;  %v601_v42 = vadd.f32 %v1229_v12, %v600_v38  ;;  %v624_v44 = vadd.f32 %v1267_v7, %v1264_v3  ;;  %v441_v50 = vmul.f32 %v389_v27, %v389_v27  ;;  %v493_v8 = vmul.f32 %v1163_v26, %v440_v29  ;;  %v677_v38 = vld [vmem:[%s1124_s4] sm:$0xff] }
  0xe1   : > { %v975_v48 = vpop.eup %974  ;;  %v605_v28 = vadd.f32 %v1253_v47, %v604_v25  ;;  %v609_v51 = vadd.f32 %v1205_v49, %v1201_v45  ;;  %992 = vpow2.f32 %v591_v4  ;;  %v616_v37 = vadd.f32 %v1241_v33, %v615_v41  ;;  %v678_v4 = vld [vmem:[%s1124_s4 + $0x8] sm:$0xff] }
  0xe2   : > { %v977_v55 = vpop.eup %976  ;;  %602 = vadd.xlane.f32.xlu1 %v601_v42  ;;  %v625_v43 = vadd.f32 %v1269_v14, %v624_v44  ;;  %v634_v12 = vadd.f32 %v1301_v19, %v1297_v11  ;;  %994 = vpow2.f32 %v593_v17  ;;  %v619_v47 = vadd.f32 %v1286_v52, %v1281_v39  ;;  %v680_v17 = vld [vmem:[%s1124_s4 + $0x18] sm:$0xff]  ;;  %v679_v44 = vld [vmem:[%s1124_s4 + $0x10] sm:$0xff] }
  0xe3   : > { %v979_v3 = vpop.eup %978  ;;  %v606_v7 = vadd.f32 %v1255_v54, %v605_v28  ;;  %v610_v57 = vadd.f32 %v1210_v53, %v609_v51  ;;  %996 = vpow2.f32 %v589_v13  ;;  %v581_v45 = vmul.f32 1.442695, %v486_v36 }
  0xe4   : > { %998 = vpow2.f32 %v579_v34  ;;  %v494_v33 = vmul.f32 %v1163_v26, %v441_v50  ;;  %v595_v60 = vmul.f32 1.442695, %v493_v8  ;;  %v626_v11 = vadd.f32 %v1273_v20, %v625_v43 }
  0xe5   : > { %v981_v49 = vpop.eup %980  ;;  %607 = vadd.xlane.f32.xlu0 %v606_v7  ;;  %v635_v19 = vadd.f32 %v1306_v35, %v634_v12  ;;  %v644_v54 = vadd.f32 %v969_v32, %v967_v21  ;;  %v611_v53 = vadd.f32 %v1215_v58, %v610_v57  ;;  %v620_v39 = vadd.f32 %v1291_v62, %v619_v47  ;;  %v684_v12 = vld [vmem:[%s1124_s4 + $0x38] sm:$0xff] }
  0xe6   : > { %v983_v14 = vpop.eup %982  ;;  %617 = vadd.xlane.f32.xlu1 %v616_v37  ;;  %v629_v52 = vadd.f32 %v1317_v56, %v1311_v46  ;;  %1000 = vpow2.f32 %v581_v45  ;;  %v597_v26 = vmul.f32 1.442695, %v494_v33  ;;  %v639_v58 = vadd.f32 %v977_v55, %v975_v48  ;;  %v682_v48 = vld [vmem:[%s1124_s4 + $0x28] sm:$0xff]  ;;  %v681_v37 = vld [vmem:[%s1124_s4 + $0x20] sm:$0xff]  ;;  %v683_v33 = vld [vmem:[%s1124_s4 + $0x30] sm:$0xff] }
  0xe7   : > { %v985_v61 = vpop.eup %984  ;;  %1002 = vpow2.f32 %v595_v60  ;;  %v636_v59 = vadd.f32 %v1308_v40, %v635_v19  ;;  %v645_v0 = vadd.f32 %v971_v63, %v644_v54  ;;  %v621_v35 = vadd.f32 %v1295_v5, %v620_v39 }
  0xe8   : > { %v654_v20 = vadd.f32 %v985_v61, %v983_v14  ;;  %v630_v6 = vadd.f32 %v1322_v2, %v629_v52  ;;  %1004 = vpow2.f32 %v597_v26  ;;  %v640_v13 = vadd.f32 %v979_v3, %v639_v58  ;;  %v685_v26 = vld [vmem:[%s1124_s4 + $0x40] sm:$0xff] }
  0xe9   : > { %612 = vadd.xlane.f32.xlu0 %v611_v53  ;;  %v646_v46 = vadd.f32 %v973_v18, %v645_v0  ;;  %v1376_v8 = vstv %s860_s8 }
  0xea   : > { %627 = vadd.xlane.f32.xlu1 %v626_v11  ;;  %v987_v1 = vpop.eup %986  ;;  %v631_v23 = vadd.f32 %v1324_v10, %v630_v6  ;;  %v641_v2 = vadd.f32 %v981_v49, %v640_v13  ;;  %v686_v11 = vld [vmem:[%s1124_s4 + $0x48] sm:$0xff] }
  0xeb   : > { %v989_v22 = vpop.eup %988 }
  0xec   : > { %v991_v62 = vpop.eup %990  ;;  %v649_v40 = vadd.f32 %v989_v22, %v987_v1 }
  0xed   : > { %622 = vadd.xlane.f32.xlu0 %v621_v35  ;;  %v655_v56 = vadd.f32 %v991_v62, %v654_v20  ;;  %v688_v20 = vld [vmem:[%s1124_s4 + $0x58] sm:$0xff] }
  0xee   : > { %637 = vadd.xlane.f32.xlu1 %v636_v59  ;;  %v993_v9 = vpop.eup %992 }
  0xef   : > { %v995_v15 = vpop.eup %994 }
  0xf0   : > { %v997_v16 = vpop.eup %996  ;;  %v659_v27 = vadd.f32 %v995_v15, %v993_v9 }
  0xf1   : > { %632 = vadd.xlane.f32.xlu0 %v631_v23  ;;  %v999_v24 = vpop.eup %998  ;;  %v656_v5 = vadd.f32 %v997_v16, %v655_v56  ;;  %v689_v16 = vld [vmem:[%s1124_s4 + $0x60] sm:$0xff] }
  0xf2   : > { %647 = vadd.xlane.f32.xlu1 %v646_v46  ;;  %v650_v21 = vadd.f32 %v999_v24, %v649_v40  ;;  %v687_v46 = vld [vmem:[%s1124_s4 + $0x50] sm:$0xff] }
  0xf3   : > { %v1001_v29 = vpop.eup %1000 }
  0xf4   : > { %v1003_v30 = vpop.eup %1002  ;;  %v651_v10 = vadd.f32 %v1001_v29, %v650_v21 }
  0xf5   : > { %642 = vadd.xlane.f32.xlu0 %v641_v2  ;;  %v660_v31 = vadd.f32 %v1003_v30, %v659_v27  ;;  %v1005_v32 = vpop.eup %1004 }
  0xf6   : > { %657 = vadd.xlane.f32.xlu1 %v656_v5 }
  0xf7   : > { %v661_v36 = vadd.f32 %v1005_v32, %v660_v31 }
  0xf9   : > { %652 = vadd.xlane.f32.xlu0 %v651_v10 }
  0xfd   : > { %662 = vadd.xlane.f32.xlu0 %v661_v36 }
 0x16b   : > { %v603_v41 = vpop.xlane.xlu1 %602 }
 0x16c   : > { %v690_v63 = vadd.f32 %v677_v38, %v603_v41 }
 0x16e   : > { %704 = vst.msk [vmem:[%s1124_s4] sm:$0xff] %vm223_vm0, %v690_v63  ;;  %v608_v25 = vpop.xlane.xlu0 %607 }
 0x16f   : > { %v618_v18 = vpop.xlane.xlu1 %617  ;;  %v691_v34 = vadd.f32 %v678_v4, %v608_v25 }
 0x170   : > { %v693_v42 = vadd.f32 %v680_v17, %v618_v18 }
 0x171   : > { %705 = vst.msk [vmem:[%s1124_s4 + $0x8] sm:$0xff] %vm223_vm0, %v691_v34 }
 0x172   : > { %707 = vst.msk [vmem:[%s1124_s4 + $0x18] sm:$0xff] %vm223_vm0, %v693_v42  ;;  %v613_v50 = vpop.xlane.xlu0 %612 }
 0x173   : > { %v628_v28 = vpop.xlane.xlu1 %627  ;;  %v692_v51 = vadd.f32 %v679_v44, %v613_v50 }
 0x174   : > { %v695_v55 = vadd.f32 %v682_v48, %v628_v28 }
 0x175   : > { %v720_v43 = vld [vmem:[%s1124_s4] sm:$0xff]  ;;  %706 = vst.msk [vmem:[%s1124_s4 + $0x10] sm:$0xff] %vm223_vm0, %v692_v51 }
 0x176   : > { %v735_v3 = vmul.f32 %v1376_v8, %v720_v43  ;;  %709 = vst.msk [vmem:[%s1124_s4 + $0x28] sm:$0xff] %vm223_vm0, %v695_v55  ;;  %v623_v7 = vpop.xlane.xlu0 %622 }
 0x177   : > { %v638_v57 = vpop.xlane.xlu1 %637  ;;  %v694_v47 = vadd.f32 %v681_v37, %v623_v7 }
 0x178   : > { %748 = vst.msk [vmem:[%s1124_s4] sm:$0xff] %vm223_vm0, %v735_v3  ;;  %v721_v45 = vld [vmem:[%s1124_s4 + $0x8] sm:$0xff]  ;;  %v697_v49 = vadd.f32 %v684_v12, %v638_v57 }
 0x179   : > { %v723_v60 = vld [vmem:[%s1124_s4 + $0x18] sm:$0xff]  ;;  %v736_v14 = vmul.f32 %v1376_v8, %v721_v45  ;;  %708 = vst.msk [vmem:[%s1124_s4 + $0x20] sm:$0xff] %vm223_vm0, %v694_v47 }
 0x17a   : > { %v738_v19 = vmul.f32 %v1376_v8, %v723_v60  ;;  %711 = vst.msk [vmem:[%s1124_s4 + $0x38] sm:$0xff] %vm223_vm0, %v697_v49  ;;  %v633_v54 = vpop.xlane.xlu0 %632 }
 0x17b   : > { %749 = vst.msk [vmem:[%s1124_s4 + $0x8] sm:$0xff] %vm223_vm0, %v736_v14  ;;  %v648_v61 = vpop.xlane.xlu1 %647  ;;  %v696_v53 = vadd.f32 %v683_v33, %v633_v54 }
 0x17c   : > { %751 = vst.msk [vmem:[%s1124_s4 + $0x18] sm:$0xff] %vm223_vm0, %v738_v19  ;;  %v722_v39 = vld [vmem:[%s1124_s4 + $0x10] sm:$0xff]  ;;  %v699_v52 = vadd.f32 %v686_v11, %v648_v61 }
 0x17d   : > { %v725_v59 = vld [vmem:[%s1124_s4 + $0x28] sm:$0xff]  ;;  %v737_v0 = vmul.f32 %v1376_v8, %v722_v39  ;;  %710 = vst.msk [vmem:[%s1124_s4 + $0x30] sm:$0xff] %vm223_vm0, %v696_v53 }
 0x17e   : > { %v740_v1 = vmul.f32 %v1376_v8, %v725_v59  ;;  %713 = vst.msk [vmem:[%s1124_s4 + $0x48] sm:$0xff] %vm223_vm0, %v699_v52  ;;  %v643_v35 = vpop.xlane.xlu0 %642 }
 0x17f   : > { %750 = vst.msk [vmem:[%s1124_s4 + $0x10] sm:$0xff] %vm223_vm0, %v737_v0  ;;  %v658_v6 = vpop.xlane.xlu1 %657  ;;  %v698_v58 = vadd.f32 %v685_v26, %v643_v35 }
 0x180   : > { %753 = vst.msk [vmem:[%s1124_s4 + $0x28] sm:$0xff] %vm223_vm0, %v740_v1  ;;  %v724_v22 = vld [vmem:[%s1124_s4 + $0x20] sm:$0xff]  ;;  %v701_v62 = vadd.f32 %v688_v20, %v658_v6 }
 0x181   : > { %v727_v56 = vld [vmem:[%s1124_s4 + $0x38] sm:$0xff]  ;;  %v739_v9 = vmul.f32 %v1376_v8, %v724_v22  ;;  %712 = vst.msk [vmem:[%s1124_s4 + $0x40] sm:$0xff] %vm223_vm0, %v698_v58 }
 0x182   : > { %v742_v23 = vmul.f32 %v1376_v8, %v727_v56  ;;  %715 = vst.msk [vmem:[%s1124_s4 + $0x58] sm:$0xff] %vm223_vm0, %v701_v62  ;;  %v653_v13 = vpop.xlane.xlu0 %652 }
 0x183   : > { %752 = vst.msk [vmem:[%s1124_s4 + $0x20] sm:$0xff] %vm223_vm0, %v739_v9  ;;  %v700_v40 = vadd.f32 %v687_v46, %v653_v13 }
 0x184   : > { %755 = vst.msk [vmem:[%s1124_s4 + $0x38] sm:$0xff] %vm223_vm0, %v742_v23  ;;  %v726_v15 = vld [vmem:[%s1124_s4 + $0x30] sm:$0xff] }
 0x185   : > { %v729_v24 = vld [vmem:[%s1124_s4 + $0x48] sm:$0xff]  ;;  %v741_v5 = vmul.f32 %v1376_v8, %v726_v15  ;;  %714 = vst.msk [vmem:[%s1124_s4 + $0x50] sm:$0xff] %vm223_vm0, %v700_v40 }
 0x186   : > { %v744_v2 = vmul.f32 %v1376_v8, %v729_v24  ;;  %v663_v21 = vpop.xlane.xlu0 %662 }
 0x187   : > { %754 = vst.msk [vmem:[%s1124_s4 + $0x30] sm:$0xff] %vm223_vm0, %v741_v5  ;;  %v702_v27 = vadd.f32 %v689_v16, %v663_v21 }
 0x188   : > { %757 = vst.msk [vmem:[%s1124_s4 + $0x48] sm:$0xff] %vm223_vm0, %v744_v2  ;;  %v728_v29 = vld [vmem:[%s1124_s4 + $0x40] sm:$0xff] }
 0x189   : > { %v731_v30 = vld [vmem:[%s1124_s4 + $0x58] sm:$0xff]  ;;  %v743_v10 = vmul.f32 %v1376_v8, %v728_v29  ;;  %716 = vst.msk [vmem:[%s1124_s4 + $0x60] sm:$0xff] %vm223_vm0, %v702_v27 }
 0x18a   : > { %v746_v31 = vmul.f32 %v1376_v8, %v731_v30 }
 0x18b   : > { %756 = vst.msk [vmem:[%s1124_s4 + $0x40] sm:$0xff] %vm223_vm0, %v743_v10 }
 0x18c   : > { %759 = vst.msk [vmem:[%s1124_s4 + $0x58] sm:$0xff] %vm223_vm0, %v746_v31  ;;  %v730_v32 = vld [vmem:[%s1124_s4 + $0x50] sm:$0xff] }
 0x18d   : > { %v745_v36 = vmul.f32 %v1376_v8, %v730_v32 }
 0x18f   : > { %758 = vst.msk [vmem:[%s1124_s4 + $0x50] sm:$0xff] %vm223_vm0, %v745_v36 }
 0x190   : > { %v732_v38 = vld [vmem:[%s1124_s4 + $0x60] sm:$0xff] }
 0x191   : > { %v747_v41 = vmul.f32 %v1376_v8, %v732_v38 }
 0x193   : > { %760 = vst.msk [vmem:[%s1124_s4 + $0x60] sm:$0xff] %vm223_vm0, %v747_v41 }
 0x194 PF: > { %s14_s14 = sadd.s32 1, %s1047_s14   ;;  %s1473_s12 = smov %s1043_s13 }
 0x195   : > { %p11_p2 = scmp.ge.s32.totalorder %s14_s14, 4   ;;  %s1474_s13 = smov %s1476_s16 }
 0x197   :  { %13 = sbr.rel (!%p11_p2) target bundleno = 2 (0x2), region = 78 }
 0x19c   :  { %783 = vsyncpa [#allocation3], 1 }
 0x19d   :  { %785 = vsyncpa [#allocation3 + $0x1], 1 }

</bundles_post_ra>
